<compile_context>
chip_gen: v5e
topology: v5e:2x2
jax: 0.10.0
libtpu: 0.0.40
codegen_flags: <defaults>
</compile_context>

<pallas_src>
import math
import functools

import jax
import jax.numpy as jnp
from jax.experimental import pallas as pl
from jax.experimental.pallas import tpu as pltpu


# ----------------------------------------------------------------------------
# Tiling helper
# ----------------------------------------------------------------------------
def _tile(dim, pref, align):
    """Largest tile <= pref that divides `dim` and is a multiple of `align`;
    falls back to the full dim (always a legal block shape)."""
    if dim <= pref:
        return dim
    t = (pref // align) * align
    while t >= align:
        if dim % t == 0:
            return t
        t -= align
    return dim


# ----------------------------------------------------------------------------
# Tiled linear:  y = x @ w + b   (x: (M,K), w: (K,N) bf16, b: (1,N) f32)
# ----------------------------------------------------------------------------
def _linear_kernel(x_ref, w_ref, b_ref, o_ref, acc_ref):
    k = pl.program_id(2)

    @pl.when(k == 0)
    def _():
        acc_ref[...] = jnp.zeros_like(acc_ref)

    # per-tile cast of the activation (avoids a standalone HBM cast pass)
    acc_ref[...] += jnp.dot(x_ref[...].astype(jnp.bfloat16), w_ref[...],
                            preferred_element_type=jnp.float32)

    @pl.when(k == pl.num_programs(2) - 1)
    def _():
        o_ref[...] = (acc_ref[...] + b_ref[...]).astype(o_ref.dtype)


def linear(x2d, w_kn, b_1n, *, out_dtype=jnp.float32,
           tm_pref=512, tn_pref=512, tk_pref=512):
    """x2d: (M,K); w_kn: (K,N) pre-transposed bf16; b_1n: (1,N) f32."""
    M, K = x2d.shape
    K2, N = w_kn.shape
    assert K == K2
    tm = _tile(M, tm_pref, 16)    # bf16 MXU operand -> 16-row sublane packing
    tn = _tile(N, tn_pref, 128)
    tk = _tile(K, tk_pref, 128)
    grid = (M // tm, N // tn, K // tk)
    cost = pl.CostEstimate(
        flops=2 * M * N * K,
        transcendentals=0,
        bytes_accessed=int(M * K * jnp.dtype(x2d.dtype).itemsize + K * N * 2
                           + N * 4 + M * N * jnp.dtype(out_dtype).itemsize))
    return pl.pallas_call(
        _linear_kernel,
        out_shape=jax.ShapeDtypeStruct((M, N), out_dtype),
        grid=grid,
        in_specs=[pl.BlockSpec((tm, tk), lambda i, j, k: (i, k)),
                  pl.BlockSpec((tk, tn), lambda i, j, k: (k, j)),
                  pl.BlockSpec((1, tn), lambda i, j, k: (0, j))],
        out_specs=pl.BlockSpec((tm, tn), lambda i, j, k: (i, j)),
        scratch_shapes=[pltpu.VMEM((tm, tn), jnp.float32)],
        compiler_params=pltpu.CompilerParams(
            dimension_semantics=("parallel", "parallel", "arbitrary")),
        cost_estimate=cost,
    )(x2d, w_kn.astype(jnp.bfloat16), b_1n.astype(jnp.float32))


# ----------------------------------------------------------------------------
# Attention core: all heads per (batch, q-tile) step, head-mean weights fused
# ----------------------------------------------------------------------------
def _attn_kernel(q_ref, kv_ref, bias_ref, o_ref, w_ref, *, num_heads, head_dim):
    H, Dh = num_heads, head_dim
    E = H * Dh
    tq = q_ref.shape[1]
    Lk = kv_ref.shape[1]

    # Hoisted bias broadcast (loop-invariant; JAX does not CSE broadcast_in_dim)
    bias = jnp.broadcast_to(bias_ref[0], (tq, Lk)).astype(jnp.float32)

    for h in range(H):                     # static, unrolled over heads
        q_lo, q_hi = h * Dh, (h + 1) * Dh
        v_lo, v_hi = E + h * Dh, E + (h + 1) * Dh
        qh = q_ref[0, :, q_lo:q_hi].astype(jnp.bfloat16)        # (tq, Dh)
        kh = kv_ref[0, :, q_lo:q_hi].astype(jnp.bfloat16)       # (Lk, Dh)
        vh = kv_ref[0, :, v_lo:v_hi].astype(jnp.bfloat16)       # (Lk, Dh)

        s = jax.lax.dot_general(qh, kh, (((1,), (1,)), ((), ())),
                                preferred_element_type=jnp.float32)  # (tq, Lk)
        s = s + bias
        m = jnp.max(s, axis=-1, keepdims=True)        # f32 softmax (v5e-safe)
        p = jnp.exp(s - m)
        l = jnp.sum(p, axis=-1, keepdims=True)
        pn = p * (1.0 / l)                 # exact softmax (weights are public)

        oh = jnp.dot(pn.astype(jnp.bfloat16), vh,
                     preferred_element_type=jnp.float32)             # (tq, Dh)
        # store straight into the VMEM-resident output block (no concat, no
        # register carry of per-head outputs)
        o_ref[:, :, q_lo:q_hi] = oh[None].astype(o_ref.dtype)

        # head-mean weights accumulated in the output block (no vreg carry)
        if h == 0:
            w_ref[...] = pn[None].astype(w_ref.dtype)
        else:
            w_ref[...] = w_ref[...] + pn[None].astype(w_ref.dtype)

    w_ref[...] = w_ref[...] * (1.0 / H)


def mha_core(qp, kvp, bias, *, num_heads):
    """qp: (B,Lq,E) bf16; kvp: (B,Lk,2E) bf16 packed [K|V]; bias: (B,1,Lk) f32.
    Returns merged-head attn out (B,Lq,E) bf16 and head-averaged weights
    (B,Lq,Lk) f32."""
    B, Lq, E = qp.shape
    _, Lk, _ = kvp.shape
    Dh = E // num_heads
    tq = _tile(Lq, 512, 16)
    kern = functools.partial(_attn_kernel, num_heads=num_heads, head_dim=Dh)
    cost = pl.CostEstimate(
        flops=4 * B * Lq * Lk * E,                       # QK^T + PV
        transcendentals=B * num_heads * Lq * Lk,         # exp
        bytes_accessed=int(B * Lq * E * 2 + B * Lk * 2 * E * 2 + B * Lk * 4
                           + B * Lq * E * 2 + B * Lq * Lk * 4))
    return pl.pallas_call(
        kern,
        out_shape=(jax.ShapeDtypeStruct((B, Lq, E), jnp.bfloat16),
                   jax.ShapeDtypeStruct((B, Lq, Lk), jnp.float32)),
        grid=(B, Lq // tq),
        in_specs=[pl.BlockSpec((1, tq, E), lambda b, i: (b, i, 0)),
                  pl.BlockSpec((1, Lk, 2 * E), lambda b, i: (b, 0, 0)),
                  pl.BlockSpec((1, 1, Lk), lambda b, i: (b, 0, 0))],
        out_specs=(pl.BlockSpec((1, tq, E), lambda b, i: (b, i, 0)),
                   pl.BlockSpec((1, tq, Lk), lambda b, i: (b, i, 0))),
        compiler_params=pltpu.CompilerParams(
            dimension_semantics=("parallel", "parallel"),
            vmem_limit_bytes=64 * 1024 * 1024),
        cost_estimate=cost,
    )(qp, kvp, bias)


# ----------------------------------------------------------------------------
# Parameters: torch-layout init + one-time algebraic folding / layout prep
# ----------------------------------------------------------------------------
def init_attention_params(key, query_channels, num_heads, embed_dim,
                          context_channels=None, output_channels=None):
    ctx = query_channels if context_channels is None else context_channels
    out = query_channels if output_channels is None else output_channels
    ks = jax.random.split(key, 8)
    s = 0.05
    return {
        "to_q_w":     jax.random.normal(ks[0], (embed_dim, query_channels), jnp.float32) * s,
        "to_kv_w":    jax.random.normal(ks[1], (2 * embed_dim, ctx), jnp.float32) * s,
        "in_proj_w":  jax.random.normal(ks[2], (3 * embed_dim, embed_dim), jnp.float32) * s,
        "in_proj_b":  jax.random.normal(ks[3], (3 * embed_dim,), jnp.float32) * s,
        "out_proj_w": jax.random.normal(ks[4], (embed_dim, embed_dim), jnp.float32) * s,
        "out_proj_b": jax.random.normal(ks[5], (embed_dim,), jnp.float32) * s,
        "to_out_w":   jax.random.normal(ks[6], (out, embed_dim), jnp.float32) * s,
        "to_out_b":   jax.random.normal(ks[7], (out,), jnp.float32) * s,
    }


def fold_attention_params(params, num_heads):
    """One-time algebraic fusion + (K,N) bf16 layout prep of the weights."""
    E = params["out_proj_w"].shape[0]
    Dh = E // num_heads
    scale = 1.0 / math.sqrt(Dh)

    Wq, Wk, Wv = jnp.split(params["in_proj_w"], 3, axis=0)
    bq, bk, bv = jnp.split(params["in_proj_b"], 3, axis=0)
    to_k_w, to_v_w = jnp.split(params["to_kv_w"], 2, axis=0)

    # q path: to_q (bias-free) -> in_proj Wq, with the softmax scale folded in
    Wq_eff = (Wq @ params["to_q_w"]) * scale            # (E, Cq)
    bq_eff = bq * scale
    # packed kv path: to_kv -> in_proj Wk/Wv, concatenated along output dim
    Wkv_eff = jnp.concatenate([Wk @ to_k_w, Wv @ to_v_w], axis=0)   # (2E, Cc)
    bkv_eff = jnp.concatenate([bk, bv], axis=0)
    # output path: out_proj -> to_out fused into a single affine map
    Wo_eff = params["to_out_w"] @ params["out_proj_w"]              # (out, E)
    bo_eff = params["out_proj_b"] @ params["to_out_w"].T + params["to_out_b"]

    def prep_w(w):   # torch (N,K) -> (K,N) bf16
        return jnp.asarray(w, jnp.float32).T.astype(jnp.bfloat16)

    def prep_b(b):
        b = jnp.asarray(b, jnp.float32)
        return b.reshape(1, b.shape[0])

    return {
        "wq": prep_w(Wq_eff),  "bq": prep_b(bq_eff),
        "wkv": prep_w(Wkv_eff), "bkv": prep_b(bkv_eff),
        "wo": prep_w(Wo_eff),  "bo": prep_b(bo_eff),
        "num_heads": num_heads,
    }


# ----------------------------------------------------------------------------
# Forward
# ----------------------------------------------------------------------------
def attention_forward(prepared, query, context=None, key_padding_mask=None,
                      *, num_heads):
    if context is None:
        context = query
    B, Lq, Cq = query.shape
    _, Lk, Cc = context.shape
    E = prepared["wq"].shape[1]
    out_dim = prepared["wo"].shape[1]

    # fused projections (3 tiled linear kernels total)
    qp = linear(query.reshape(B * Lq, Cq), prepared["wq"], prepared["bq"],
                out_dtype=jnp.bfloat16).reshape(B, Lq, E)
    kvp = linear(context.reshape(B * Lk, Cc), prepared["wkv"], prepared["bkv"],
                 out_dtype=jnp.bfloat16).reshape(B, Lk, 2 * E)

    # key_padding_mask (bool, True == ignore) -> additive bias (B, 1, Lk)
    if key_padding_mask is None:
        bias = jnp.zeros((B, 1, Lk), jnp.float32)
    else:
        bias = jnp.where(key_padding_mask, -1e9, 0.0).astype(
            jnp.float32).reshape(B, 1, Lk)

    # per-batch attention over all heads; head-averaged weights fused in-kernel
    attn, attn_weights = mha_core(qp, kvp, bias, num_heads=num_heads)

    # fused out_proj + to_out
    out = linear(attn.reshape(B * Lq, E), prepared["wo"], prepared["bo"],
                 out_dtype=jnp.float32).reshape(B, Lq, out_dim)
    return out, attn_weights


# ----------------------------------------------------------------------------
# Pure-JAX reference (f32, unfolded weights) for numerical sanity check
# ----------------------------------------------------------------------------
def attention_reference(params, query, context=None, key_padding_mask=None,
                        *, num_heads):
    if context is None:
        context = query
    B, Lq, _ = query.shape
    _, Lk, _ = context.shape
    E = params["to_q_w"].shape[0]
    H, Dh = num_heads, E // num_heads
    q = query @ params["to_q_w"].T
    kv = context @ params["to_kv_w"].T
    k, v = kv[..., :E], kv[..., E:]
    Wq, Wk, Wv = jnp.split(params["in_proj_w"], 3, axis=0)
    bq, bk, bv = jnp.split(params["in_proj_b"], 3, axis=0)
    qp, kp, vp = q @ Wq.T + bq, k @ Wk.T + bk, v @ Wv.T + bv
    qh = qp.reshape(B, Lq, H, Dh).transpose(0, 2, 1, 3)
    kh = kp.reshape(B, Lk, H, Dh).transpose(0, 2, 1, 3)
    vh = vp.reshape(B, Lk, H, Dh).transpose(0, 2, 1, 3)
    s = jnp.einsum("bhqd,bhkd->bhqk", qh, kh) / math.sqrt(Dh)
    if key_padding_mask is not None:
        s = s + jnp.where(key_padding_mask, -1e9, 0.0)[:, None, None, :]
    p = jax.nn.softmax(s, axis=-1)
    oh = jnp.einsum("bhqk,bhkd->bhqd", p, vh)
    attn = oh.transpose(0, 2, 1, 3).reshape(B, Lq, E)
    attn = attn @ params["out_proj_w"].T + params["out_proj_b"]
    out = attn @ params["to_out_w"].T + params["to_out_b"]
    return out, jnp.mean(p, axis=1)


# ----------------------------------------------------------------------------
if __name__ == "__main__":
    B, Lq, Lk = 2, 8, 8
    query_channels = 32
    embed_dim = 32
    num_heads = 4

    root = jax.random.PRNGKey(0)
    k_param, k_q = jax.random.split(root, 2)
    params = init_attention_params(k_param, query_channels, num_heads, embed_dim)
    prepared = fold_attention_params(params, num_heads)

    query = jax.random.normal(k_q, (B, Lq, query_channels), jnp.float32)
    # self-attention path (context=None) with a key padding mask masking the
    # last key position of the second batch element
    key_padding_mask = jnp.zeros((B, Lk), bool).at[1, -1].set(True)

    out, attn_w = attention_forward(prepared, query, context=None,
                                    key_padding_mask=key_padding_mask,
                                    num_heads=num_heads)
    out = jax.block_until_ready(out)
    attn_w = jax.block_until_ready(attn_w)

    ref_out, ref_w = attention_reference(params, query, context=None,
                                         key_padding_mask=key_padding_mask,
                                         num_heads=num_heads)
    assert out.shape == (B, Lq, query_channels)
    assert attn_w.shape == (B, Lq, Lk)
    # bf16 MXU operands -> loosened tolerances vs the f32 reference
    assert jnp.allclose(out, ref_out, atol=2e-2, rtol=2e-2), \
        float(jnp.max(jnp.abs(out - ref_out)))
    assert jnp.allclose(attn_w, ref_w, atol=2e-2, rtol=2e-2), \
        float(jnp.max(jnp.abs(attn_w - ref_w)))

    print("KERNEL_OK")
</pallas_src>

<mosaic_0001>
module attributes {stable_mosaic.version = 11 : i64} {
  func.func @_linear_kernel(%arg0: i32, %arg1: i32, %arg2: i32, %arg3: memref<16x32xf32, #tpu.memory_space<vmem>>, %arg4: memref<32x32xbf16, #tpu.memory_space<vmem>>, %arg5: memref<1x32xf32, #tpu.memory_space<vmem>>, %arg6: memref<16x32xbf16, #tpu.memory_space<vmem>>, %arg7: memref<16x32xf32, #tpu.memory_space<vmem>>) attributes {dimension_semantics = [#tpu.dimension_semantics<parallel>, #tpu.dimension_semantics<parallel>, #tpu.dimension_semantics<arbitrary>], iteration_bounds = array<i64: 1, 1, 1>, scalar_prefetch = 0 : i64, scratch_operands = 1 : i64, tpu.core_type = #tpu.core_type<tc>, window_params = [{transform_indices = @transform_0, window_bounds = array<i64: 16, 32>}, {transform_indices = @transform_1, window_bounds = array<i64: 32, 32>}, {transform_indices = @transform_2, window_bounds = array<i64: 1, 32>}, {transform_indices = @transform_3, window_bounds = array<i64: 16, 32>}]} {
    %c0_i32 = arith.constant 0 : i32
    %0 = arith.cmpi eq, %arg2, %c0_i32 : i32
    %1 = arith.extui %0 : i1 to i32
    %c0_i32_0 = arith.constant 0 : i32
    %2 = arith.cmpi ne, %1, %c0_i32_0 : i32
    scf.if %2 {
      %cst_10 = arith.constant 0.000000e+00 : f32
      %13 = vector.broadcast %cst_10 : f32 to vector<16x32xf32>
      %c0_11 = arith.constant 0 : index
      %c0_12 = arith.constant 0 : index
      %14 = vector.load %arg7[%c0_11, %c0_12] : memref<16x32xf32, #tpu.memory_space<vmem>>, vector<16x32xf32>
      tpu.vector_store %arg7[%c0_11, %c0_12], %13 {strides = array<i32>} : memref<16x32xf32, #tpu.memory_space<vmem>>, vector<16x32xf32>,
    } else {
    }
    %c0 = arith.constant 0 : index
    %c0_1 = arith.constant 0 : index
    %3 = vector.load %arg7[%c0, %c0_1] : memref<16x32xf32, #tpu.memory_space<vmem>>, vector<16x32xf32>
    %c0_2 = arith.constant 0 : index
    %c0_3 = arith.constant 0 : index
    %4 = vector.load %arg3[%c0_2, %c0_3] : memref<16x32xf32, #tpu.memory_space<vmem>>, vector<16x32xf32>
    %5 = arith.truncf %4 : vector<16x32xf32> to vector<16x32xbf16>
    %c0_4 = arith.constant 0 : index
    %c0_5 = arith.constant 0 : index
    %6 = vector.load %arg4[%c0_4, %c0_5] : memref<32x32xbf16, #tpu.memory_space<vmem>>, vector<32x32xbf16>
    %cst = arith.constant dense<0.000000e+00> : vector<16x32xf32>
    %7 = tpu.matmul %5, %6, %cst {dimension_numbers = #tpu.dot_dimension_numbers<[1], [0], [0], [1], [0, 0, 1, 1], [], []>} : vector<16x32xbf16>, vector<32x32xbf16>, vector<16x32xf32> -> vector<16x32xf32>
    %8 = arith.addf %3, %7 : vector<16x32xf32>
    %c0_6 = arith.constant 0 : index
    %c0_7 = arith.constant 0 : index
    %9 = vector.load %arg7[%c0_6, %c0_7] : memref<16x32xf32, #tpu.memory_space<vmem>>, vector<16x32xf32>
    tpu.vector_store %arg7[%c0_6, %c0_7], %8 {strides = array<i32>} : memref<16x32xf32, #tpu.memory_space<vmem>>, vector<16x32xf32>,
    %c0_i32_8 = arith.constant 0 : i32
    %10 = arith.cmpi eq, %arg2, %c0_i32_8 : i32
    %11 = arith.extui %10 : i1 to i32
    %c0_i32_9 = arith.constant 0 : i32
    %12 = arith.cmpi ne, %11, %c0_i32_9 : i32
    scf.if %12 {
      %c0_10 = arith.constant 0 : index
      %c0_11 = arith.constant 0 : index
      %13 = vector.load %arg7[%c0_10, %c0_11] : memref<16x32xf32, #tpu.memory_space<vmem>>, vector<16x32xf32>
      %c0_12 = arith.constant 0 : index
      %c0_13 = arith.constant 0 : index
      %14 = vector.load %arg5[%c0_12, %c0_13] : memref<1x32xf32, #tpu.memory_space<vmem>>, vector<1x32xf32>
      %15 = vector.broadcast %14 : vector<1x32xf32> to vector<16x32xf32>
      %16 = arith.addf %13, %15 : vector<16x32xf32>
      %17 = arith.truncf %16 : vector<16x32xf32> to vector<16x32xbf16>
      %c0_14 = arith.constant 0 : index
      %c0_15 = arith.constant 0 : index
      %18 = vector.load %arg6[%c0_14, %c0_15] : memref<16x32xbf16, #tpu.memory_space<vmem>>, vector<16x32xbf16>
      tpu.vector_store %arg6[%c0_14, %c0_15], %17 {strides = array<i32>} : memref<16x32xbf16, #tpu.memory_space<vmem>>, vector<16x32xbf16>,
    } else {
    }
    return
  }
  func.func @transform_0(%arg0: i32, %arg1: i32, %arg2: i32) -> (i32, i32) {
    %c0_i32 = arith.constant 0 : i32
    return %arg0, %arg2 : i32, i32
  }
  func.func @transform_1(%arg0: i32, %arg1: i32, %arg2: i32) -> (i32, i32) {
    %c0_i32 = arith.constant 0 : i32
    return %arg2, %arg1 : i32, i32
  }
  func.func @transform_2(%arg0: i32, %arg1: i32, %arg2: i32) -> (i32, i32) {
    %c0_i32 = arith.constant 0 : i32
    %c0_i32_0 = arith.constant 0 : i32
    return %c0_i32, %arg1 : i32, i32
  }
  func.func @transform_3(%arg0: i32, %arg1: i32, %arg2: i32) -> (i32, i32) {
    %c0_i32 = arith.constant 0 : i32
    return %arg0, %arg1 : i32, i32
  }
}

</mosaic_0001>

<bundles_post_ra>
// kernel: tpu_custom_call.1
= control target key start
LH: loop header
LB: loop body
LE: loop exit
PB: predicated region body
PF: predicated region fallthrough
CT: control target
= control target key end

     0   :  { %8 = vsyncpa [#allocation4], 0  ;;  %s283_s0 = inlined_call_operand.hbm [shape: f32[16,32], index: 0, kind: input, shape index: {}]   ;;  %s284_s1 = inlined_call_operand.hbm [shape: bf16[32,32], index: 1, kind: input, shape index: {}]   ;;  %s285_s2 = inlined_call_operand.vmem [shape: f32[1,32], index: 2, kind: input, shape index: {}]   ;;  %s286_s3 = inlined_call_operand.hbm [shape: bf16[16,32], index: 3, kind: output, shape index: {}]  }
   0x1   :  { %9 = vsyncpa [#allocation7], 0 }
   0x2   :  { %10 = vsyncpa [#allocation5], 0  ;;  %s15_s14 = sshll.u32 %s283_s0, 4  ;;  %s232_s15 = smov [#allocation3]   ;;  %s16_s14 = int_to_ptr.hbm [resolvable:$true] %s15_s14 }
   0x3   :  { %s17_s16 = sshll.u32 %s232_s15, 4  ;;  %s28_s19 = sshll.u32 %s284_s1, 4  ;;  %s18_s16 = int_to_ptr.vmem [resolvable:$true] %s17_s16  ;;  %s29_s19 = int_to_ptr.hbm [resolvable:$true] %s28_s19 }
   0x4   :  { %s233_s20 = smov 128   ;;  %s234_s21 = smov 8  }
   0x5   :  { %23 = dma.hbm_to_vmem [thread:$0]  %s16_s14, 256, %s18_s16, [#allocation4], %s233_s20, %s233_s20, %s234_s21  }
   0x6   :  { %s235_s22 = smov [#allocation6]   ;;  %s236_s24 = smov 64  }
   0x7   :  { %s30_s23 = sshll.u32 %s235_s22, 4  ;;  %s237_s25 = smov 4   ;;  %s31_s23 = int_to_ptr.vmem [resolvable:$true] %s30_s23 }
   0x8   :  { %36 = dma.hbm_to_vmem [thread:$0]  %s29_s19, 256, %s31_s23, [#allocation7], %s236_s24, %s236_s24, %s237_s25  }
   0x9   :  { %226 = dma.done.wait [#allocation4], 256  }
   0xa   :  { %227 = vsyncadd [#allocation4], 4294967040 }
   0xb   :  { %228 = dma.done.wait [#allocation7], 256  }
   0xc   :  { %229 = vsyncadd [#allocation7], 4294967040  ;;  %vm52_vm0 = vcmask 261120   ;;  %v238_v0 = vmov 0.0   ;;  %v144_v1 = vld [vmem:[#allocation6 + $0x8] sm:$0xff]  ;;  %v143_v2 = vld [vmem:[#allocation6] sm:$0xff] }
   0xd   :  { %53 = vst.msk [vmem:[#allocation2] sm:$0xff] %vm52_vm0, %v238_v0  ;;  %86 = vmatpush.bf16.msra.mxu0 %v144_v1  ;;  %v57_v3 = vld [vmem:[#allocation3] sm:$0xff]  ;;  %v58_v4 = vld [vmem:[#allocation3 + $0x8] sm:$0xff]  ;;  %v153_v10 = vld [vmem:[%s285_s2] ss:$0 sm:$0xff]  ;;  %vm111_vm1 = vcmask 257024  }
   0xe   :  { %54 = vst.msk [vmem:[#allocation2 + $0x8] sm:$0xff] %vm52_vm0, %v238_v0  ;;  %v59_v5 = vpack.c.bf16 %v58_v4, %v57_v3  ;;  %s239_s26 = smov [#allocation8]   ;;  %s120_s30 = sshll.u32 %s286_s3, 4  ;;  %s121_s30 = int_to_ptr.hbm [resolvable:$true] %s120_s30 }
   0xf   :  { %s118_s27 = sshll.u32 %s239_s26, 4  ;;  %s119_s27 = int_to_ptr.vmem [resolvable:$true] %s118_s27 }
  0x11   :  { %87 = vmatpush.bf16.msra.mxu0 %v143_v2 }
  0x14   :  { %142 = vmatmul.msk.bf16.vlgmr.msra.gmra.mxu0 %vm52_vm0, %v59_v5  ;;  %v55_v6 = vld [vmem:[#allocation2] sm:$0xff] }
  0x15   :  { %v56_v9 = vld [vmem:[#allocation2 + $0x8] sm:$0xff] }
  0x91   :  { %v89_v7 = vpop.f32.mrf.mxu0 }
  0x92   :  { %v94_v8 = vadd.f32 %v89_v7, %v55_v6 }
  0x94   :  { %96 = vst.msk [vmem:[#allocation2] sm:$0xff] %vm52_vm0, %v94_v8 }
  0x99   :  { %v91_v11 = vpop.f32.mrf.mxu0 }
  0x9a   :  { %v95_v12 = vadd.f32 %v91_v11, %v56_v9 }
  0x9b   :  { %v101_v13 = vld [vmem:[#allocation2] sm:$0xff] }
  0x9c   :  { %97 = vst.msk [vmem:[#allocation2 + $0x8] sm:$0xff] %vm52_vm0, %v95_v12  ;;  %v107_v14 = vadd.f32 %v153_v10, %v101_v13 }
  0x9e   :  { %v109_v15 = vpack.c.bf16 %v107_v14, %v107_v14 }
  0xa0   :  { %112 = vst.msk [vmem:[#allocation8] sm:$0xf] %vm111_vm1, %v109_v15 }
  0xa3   :  { %v102_v16 = vld [vmem:[#allocation2 + $0x8] sm:$0xff] }
  0xa4   :  { %v108_v17 = vadd.f32 %v153_v10, %v102_v16 }
  0xa6   :  { %v110_v18 = vpack.c.bf16 %v108_v17, %v108_v17 }
  0xa8   :  { %113 = vst.msk [vmem:[#allocation8 + $0x4] sm:$0xf] %vm111_vm1, %v110_v18 }
  0xa9   :  { %126 = dma.vmem_to_hbm [thread:$0]  %s119_s27, 128, %s121_s30, [#allocation5], %s236_s24, %s236_s24, %s237_s25  }
  0xaa   :  { %230 = dma.done.wait [#allocation5], 128  }
  0xab   :  { %231 = vsyncadd [#allocation5], 4294967168 }
  0xac   :  { %131 = vsyncpa [#allocation4], 1 }
  0xad   :  { %132 = vsyncpa [#allocation7], 1 }
  0xae   :  { %133 = vsyncpa [#allocation5], 1 }

</bundles_post_ra>
